<compile_context>
chip_gen: v7x
topology: tpu7x:2x2x1
jax: 0.10.0
libtpu: 0.0.40
codegen_flags: <defaults>
</compile_context>

<pallas_src>
import math
import functools

import jax
import jax.numpy as jnp
from jax import lax
from jax.experimental import pallas as pl
from jax.experimental.pallas import tpu as pltpu


# ----------------------------- glue: relative position bias -----------------

def _relative_position_bucket(relative_position, bidirectional=True,
                              num_buckets=32, max_distance=128):
    ret = jnp.zeros_like(relative_position)
    n = -relative_position
    if bidirectional:
        num_buckets //= 2
        ret = ret + (n < 0).astype(jnp.int32) * num_buckets
        n = jnp.abs(n)
    else:
        n = jnp.maximum(n, jnp.zeros_like(n))
    max_exact = num_buckets // 2
    is_small = n < max_exact
    n_safe = jnp.maximum(n, 1)  # guard log(0); branch is selected away anyway
    val_if_large = max_exact + (
        jnp.log(n_safe.astype(jnp.float32) / max_exact)
        / math.log(max_distance / max_exact)
        * (num_buckets - max_exact)
    ).astype(jnp.int32)
    val_if_large = jnp.minimum(val_if_large,
                               jnp.full_like(val_if_large, num_buckets - 1))
    ret = ret + jnp.where(is_small, n, val_if_large)
    return ret


def compute_bias(rel_attn_bias_weight, qlen, klen, bidirectional=True,
                 num_buckets=32):
    """Returns position bias of shape [n_head, qlen, klen] (float32)."""
    context_position = jnp.arange(qlen, dtype=jnp.int32)[:, None]
    memory_position = jnp.arange(klen, dtype=jnp.int32)[None, :]
    relative_position = memory_position - context_position            # [q, k]
    rp_bucket = _relative_position_bucket(
        relative_position, bidirectional=bidirectional, num_buckets=num_buckets)
    values = rel_attn_bias_weight[rp_bucket]                           # [q, k, H]
    return jnp.transpose(values, (2, 0, 1)).astype(jnp.float32)        # [H, q, k]


# ----------------------------- tiling / VMEM helpers --------------------------

_HEADROOM = 6 << 20   # compiler scratch / misc headroom inside the VMEM budget


def _vmem_budget():
    """~75% of this generation's VMEM (v5e/v6e: 128 MiB, v7x: 64 MiB)."""
    cap = 128 << 20
    try:
        info = pltpu.get_tpu_info()
        cap = int(getattr(info, "vmem_capacity_bytes", cap))
    except Exception:
        pass
    return max(32 << 20, (cap * 3) // 4)


def _vmem_limit(footprint, budget):
    return int(min(budget, max(32 << 20, footprint + _HEADROOM)))


def _head_group_candidates(n_head, d_head):
    """Head-group sizes G (dividing n_head) whose merged context width G*Dh is
    a legal lane-dense output block (multiple of 128, or the full H*Dh)."""
    legal = [g for g in range(1, n_head + 1)
             if n_head % g == 0 and ((g * d_head) % 128 == 0 or g == n_head)]
    legal.sort(key=lambda g: (0 if 128 <= g * d_head <= 512 else 1, g * d_head))
    return legal or [n_head]


def _tq_candidates(sq, cap):
    c = [t for t in range(min(sq, cap), 0, -1)
         if sq % t == 0 and (t == sq or t % 32 == 0)]
    return c or [sq]


def _tk_candidates(sk):
    c = [t for t in range(sk, 0, -1)
         if sk % t == 0 and (t == sk or t % 128 == 0)]
    return c or [sk]


def _megacore_balanced_tq(batch, n_hg, sq, tq):
    # v7x has 2 TensorCores: make sure the parallel grid extent is >= 2.
    while batch * n_hg * (sq // tq) < 2 and tq % 2 == 0 and (tq // 2) % 32 == 0:
        tq //= 2
    return tq


def _flash_footprint(g, tq, tk, dh):
    db = 2  # double-buffered pipeline blocks
    inputs = db * (g * tq * dh * 2          # Q  bf16
                   + 2 * g * tk * dh * 2    # K, V bf16
                   + g * tq * tk * 2        # bias bf16
                   + tq * tk)               # mask int8
    outputs = db * (tq * g * dh * 4)        # merged ctx f32
    scratch = (2 * g * tq + g * tq * dh) * 4
    temps = 12 * g * tq * tk                # s/p f32, p bf16, bool mask, ...
    return inputs + outputs + scratch + temps


def _prob_footprint(g, tq, sk, dh):
    db = 2
    inputs = db * (g * tq * dh * 2 + 2 * g * sk * dh * 2 + g * tq * sk * 2
                   + tq * sk)
    outputs = db * (tq * g * dh * 4 + g * tq * sk * 4)
    temps = 14 * g * tq * sk                # scores/p/prob f32 + bf16 copy
    return inputs + outputs + temps


def _choose_flash_tiles(batch, n_head, sq, sk, dh, budget):
    tq_cap = 512 if budget >= (80 << 20) else (256 if budget >= (48 << 20) else 128)
    for g in _head_group_candidates(n_head, dh):
        for tk in _tk_candidates(sk):            # biggest tk first: tk == Sk keeps
            for tq in _tq_candidates(sq, tq_cap):  # K/V resident across the q sweep
                if _flash_footprint(g, tq, tk, dh) + _HEADROOM <= budget:
                    tq = _megacore_balanced_tq(batch, n_head // g, sq, tq)
                    return g, tq, tk
    g = _head_group_candidates(n_head, dh)[0]
    return g, _tq_candidates(sq, 128)[-1], _tk_candidates(sk)[-1]


def _choose_prob_tiles(batch, n_head, sq, sk, dh, budget):
    for g in _head_group_candidates(n_head, dh):
        for tq in _tq_candidates(sq, 256):
            if _prob_footprint(g, tq, sk, dh) + _HEADROOM <= budget:
                tq = _megacore_balanced_tq(batch, n_head // g, sq, tq)
                return g, tq
    # TODO(synk): for large Sk (notably v7x's 64 MiB VMEM) the full-Sk-resident
    # prob path may not fit; a two-pass Sk-tiled prob emission would be needed.
    g = _head_group_candidates(n_head, dh)[0]
    return g, _tq_candidates(sq, 64)[-1]


# ----------------------------- Pallas kernels ---------------------------------

def _attn_prob_kernel(q_ref, k_ref, v_ref, bias_ref, mask_ref,
                      ctx_ref, prob_ref, *, group, d_head):
    """One (batch, head-group, q-tile) step; full-row softmax; emits prob."""
    q = q_ref[0]                                   # (G, tq, Dh) bf16, pre-scaled
    k = k_ref[0]                                   # (G, Sk, Dh) bf16
    v = v_ref[0]                                   # (G, Sk, Dh) bf16
    masked = (mask_ref[0, 0] != 0)[None, :, :]     # (1, tq, Sk)

    # QK^T on the MXU in bf16 (f32 accumulate): contract Dh, batch over G.
    scores = lax.dot_general(
        q, k, dimension_numbers=(((2,), (2,)), ((0,), (0,))),
        preferred_element_type=jnp.float32)        # (G, tq, Sk) f32
    scores = scores + bias_ref[...]                # bf16 bias promotes to f32
    scores = jnp.where(masked, jnp.float32(-1e9), scores)

    m = jnp.max(scores, axis=-1, keepdims=True)
    p = jnp.exp(scores - m)
    denom = jnp.sum(p, axis=-1, keepdims=True)
    prob = p * (1.0 / denom)                       # exact: rows sum to 1

    # TODO(synk): dropout omitted (eval-mode identity); for training add
    # in-kernel pltpu.prng_seed/prng_random_bits dropout here.
    ctx = lax.dot_general(
        prob.astype(v.dtype), v,
        dimension_numbers=(((2,), (1,)), ((0,), (0,))),
        preferred_element_type=jnp.float32)        # (G, tq, Dh) f32

    # Merge the head group into the lane-dense output with direct static
    # lane-slice stores (no concatenate temporary).
    for g in range(group):
        ctx_ref[0, :, g * d_head:(g + 1) * d_head] = ctx[g].astype(ctx_ref.dtype)
    prob_ref[0] = prob.astype(prob_ref.dtype)


def _attn_flash_kernel(q_ref, k_ref, v_ref, bias_ref, mask_ref, ctx_ref,
                       m_sc, l_sc, acc_sc, *, group, d_head):
    """Online-softmax (flash) path: Sk tiled as the trailing reduction axis;
    attn_prob is never materialized."""
    ki = pl.program_id(3)

    @pl.when(ki == 0)
    def _():
        m_sc[...] = jnp.full_like(m_sc, -jnp.inf)
        l_sc[...] = jnp.zeros_like(l_sc)
        acc_sc[...] = jnp.zeros_like(acc_sc)

    q = q_ref[0]                                   # (G, tq, Dh) bf16, pre-scaled
    k = k_ref[0]                                   # (G, tk, Dh) bf16
    v = v_ref[0]                                   # (G, tk, Dh) bf16
    masked = (mask_ref[0, 0] != 0)[None, :, :]     # (1, tq, tk)

    s = lax.dot_general(
        q, k, dimension_numbers=(((2,), (2,)), ((0,), (0,))),
        preferred_element_type=jnp.float32)        # (G, tq, tk) f32
    s = s + bias_ref[...]
    s = jnp.where(masked, jnp.float32(-1e9), s)

    m_prev = m_sc[...]
    m_new = jnp.maximum(m_prev, jnp.max(s, axis=-1, keepdims=True))
    alpha = jnp.exp(m_prev - m_new)
    p = jnp.exp(s - m_new)
    l_sc[...] = alpha * l_sc[...] + jnp.sum(p, axis=-1, keepdims=True)
    acc_sc[...] = alpha * acc_sc[...] + lax.dot_general(
        p.astype(v.dtype), v,
        dimension_numbers=(((2,), (1,)), ((0,), (0,))),
        preferred_element_type=jnp.float32)
    m_sc[...] = m_new

    @pl.when(ki == pl.num_programs(3) - 1)
    def _():
        out = acc_sc[...] * (1.0 / l_sc[...])      # (G, tq, Dh)
        for g in range(group):
            ctx_ref[0, :, g * d_head:(g + 1) * d_head] = \
                out[g].astype(ctx_ref.dtype)


# ----------------------------- wrapper ----------------------------------------

def scaled_dot_product_attention(Q, K, V, attn_mask, rel_attn_bias_weight,
                                 d_head, bidirectional=True,
                                 return_prob=True, merge_heads=False):
    """Q, K, V: [B, H, S, Dh] float32. attn_mask: [B, 1, Sq, Sk] (nonzero=mask).
    rel_attn_bias_weight: [32, H] float32.
    Returns (context, attn_prob); attn_prob is None when return_prob=False.
    context is [B, H, Sq, Dh] (torch layout) or [B, Sq, H*Dh] if merge_heads."""
    B, H, Sq, Dh = Q.shape
    Sk = K.shape[-2]
    out_dtype = Q.dtype
    scale = 1.0 / (d_head ** 0.5)

    # Softmax scale folded into Q, fused with the bf16 cast (one XLA pass);
    # bf16-native MXU matmuls with f32 accumulation inside the kernel.
    Qb = (Q * scale).astype(jnp.bfloat16)
    Kb = K.astype(jnp.bfloat16)
    Vb = V.astype(jnp.bfloat16)

    # Position bias streamed as bf16 (half the HBM traffic of f32).
    # TODO(synk): replace with an int8 [Sq,Sk] bucket map + cached in-kernel
    # one-hot MXU expansion to also remove the per-batch bias re-read.
    position_bias = compute_bias(
        rel_attn_bias_weight, Sq, Sk,
        bidirectional=bidirectional).astype(jnp.bfloat16)            # [H, Sq, Sk]
    mask_i8 = attn_mask.astype(jnp.int8)   # 4x less mask DMA than int32

    budget = _vmem_budget()
    flops = 4 * B * H * Sq * Sk * Dh              # two matmuls, 2 flops/MAC
    transc = B * H * Sq * Sk                      # exp

    if return_prob:
        G, tq = _choose_prob_tiles(B, H, Sq, Sk, Dh, budget)
        n_hg, n_q = H // G, Sq // tq
        footprint = _prob_footprint(G, tq, Sk, Dh)
        bytes_io = (2 * B * H * Sq * Dh + 4 * B * H * Sk * Dh      # Q + K/V bf16
                    + 2 * B * H * Sq * Sk                          # bias (per batch)
                    + B * n_hg * Sq * Sk                           # int8 mask
                    + 4 * B * Sq * H * Dh + 4 * B * H * Sq * Sk)   # ctx + prob
        cost = pl.CostEstimate(flops=flops, transcendentals=transc,
                               bytes_accessed=bytes_io)
        kernel = functools.partial(_attn_prob_kernel, group=G, d_head=Dh)
        ctx_merged, prob = pl.pallas_call(
            kernel,
            grid=(B, n_hg, n_q),
            in_specs=[
                pl.BlockSpec((1, G, tq, Dh), lambda b, h, q: (b, h, q, 0)),  # Q
                pl.BlockSpec((1, G, Sk, Dh), lambda b, h, q: (b, h, 0, 0)),  # K
                pl.BlockSpec((1, G, Sk, Dh), lambda b, h, q: (b, h, 0, 0)),  # V
                pl.BlockSpec((G, tq, Sk),    lambda b, h, q: (h, q, 0)),     # bias bf16
                pl.BlockSpec((1, 1, tq, Sk), lambda b, h, q: (b, 0, q, 0)),  # mask int8
            ],
            out_specs=(
                pl.BlockSpec((1, tq, G * Dh), lambda b, h, q: (b, q, h)),    # ctx
                pl.BlockSpec((1, G, tq, Sk),  lambda b, h, q: (b, h, q, 0)), # prob
            ),
            out_shape=(
                jax.ShapeDtypeStruct((B, Sq, H * Dh), out_dtype),
                jax.ShapeDtypeStruct((B, H, Sq, Sk), jnp.float32),
            ),
            compiler_params=pltpu.CompilerParams(
                dimension_semantics=("parallel", "parallel", "parallel"),
                vmem_limit_bytes=_vmem_limit(footprint, budget)),
            cost_estimate=cost,
        )(Qb, Kb, Vb, position_bias, mask_i8)
    else:
        G, tq, tk = _choose_flash_tiles(B, H, Sq, Sk, Dh, budget)
        n_hg, n_q, n_k = H // G, Sq // tq, Sk // tk
        footprint = _flash_footprint(G, tq, tk, Dh)
        kv_mult = 1 if n_k == 1 else n_q   # K/V stay resident across q if n_k == 1
        bytes_io = (2 * B * H * Sq * Dh + 4 * B * H * Sk * Dh * kv_mult
                    + 2 * B * H * Sq * Sk + B * n_hg * Sq * Sk
                    + 4 * B * Sq * H * Dh)
        cost = pl.CostEstimate(flops=flops, transcendentals=transc,
                               bytes_accessed=bytes_io)
        kernel = functools.partial(_attn_flash_kernel, group=G, d_head=Dh)
        ctx_merged = pl.pallas_call(
            kernel,
            grid=(B, n_hg, n_q, n_k),
            in_specs=[
                pl.BlockSpec((1, G, tq, Dh), lambda b, h, q, kk: (b, h, q, 0)),
                pl.BlockSpec((1, G, tk, Dh), lambda b, h, q, kk: (b, h, kk, 0)),
                pl.BlockSpec((1, G, tk, Dh), lambda b, h, q, kk: (b, h, kk, 0)),
                pl.BlockSpec((G, tq, tk),    lambda b, h, q, kk: (h, q, kk)),
                pl.BlockSpec((1, 1, tq, tk), lambda b, h, q, kk: (b, 0, q, kk)),
            ],
            out_specs=pl.BlockSpec((1, tq, G * Dh), lambda b, h, q, kk: (b, q, h)),
            out_shape=jax.ShapeDtypeStruct((B, Sq, H * Dh), out_dtype),
            scratch_shapes=[pltpu.VMEM((G, tq, 1), jnp.float32),
                            pltpu.VMEM((G, tq, 1), jnp.float32),
                            pltpu.VMEM((G, tq, Dh), jnp.float32)],
            compiler_params=pltpu.CompilerParams(
                dimension_semantics=("parallel", "parallel", "parallel",
                                     "arbitrary"),
                vmem_limit_bytes=_vmem_limit(footprint, budget)),
            cost_estimate=cost,
        )(Qb, Kb, Vb, position_bias, mask_i8)
        prob = None

    if merge_heads:
        context = ctx_merged                                   # [B, Sq, H*Dh]
    else:
        context = jnp.transpose(
            ctx_merged.reshape(B, Sq, H, Dh), (0, 2, 1, 3))    # [B, H, Sq, Dh]
    return context, prob


# ----------------------------- demo / smoke test ------------------------------

if __name__ == "__main__":
    B, H, S, Dh = 2, 4, 8, 32
    num_buckets = 32

    key = jax.random.PRNGKey(0)
    kq, kk_, kv, kw = jax.random.split(key, 4)
    Q = jax.random.normal(kq, (B, H, S, Dh), dtype=jnp.float32)
    K = jax.random.normal(kk_, (B, H, S, Dh), dtype=jnp.float32)
    V = jax.random.normal(kv, (B, H, S, Dh), dtype=jnp.float32)

    # Deterministic embedding table for relative_attention_bias (nn.Embedding(32, H)).
    rel_attn_bias_weight = (
        0.02 * jax.random.normal(kw, (num_buckets, H), dtype=jnp.float32))

    # Padding-style mask: mask out the last 2 key positions (nonzero = masked).
    attn_mask = jnp.zeros((B, 1, S, S), dtype=jnp.int32)
    attn_mask = attn_mask.at[:, :, :, -2:].set(1)

    attn_full = jax.jit(functools.partial(
        scaled_dot_product_attention, d_head=Dh, bidirectional=True,
        return_prob=True))
    attn_flash = jax.jit(functools.partial(
        scaled_dot_product_attention, d_head=Dh, bidirectional=True,
        return_prob=False))

    # Full path (matches torch forward: returns context and attn_prob).
    ctx, prob = attn_full(Q, K, V, attn_mask, rel_attn_bias_weight)
    # Flash path (no prob materialization) — used when prob isn't consumed.
    ctx_flash, _ = attn_flash(Q, K, V, attn_mask, rel_attn_bias_weight)
    jax.block_until_ready((ctx, prob, ctx_flash))

    # Pure-JAX reference (eval-mode torch module, f32).
    bias = compute_bias(rel_attn_bias_weight, S, S, bidirectional=True)
    scores = jnp.einsum('bhqd,bhkd->bhqk', Q, K) / (Dh ** 0.5)
    scores = scores + bias[None]
    scores = jnp.where(attn_mask.astype(bool), jnp.float32(-1e9), scores)
    prob_ref = jax.nn.softmax(scores, axis=-1)
    ctx_ref = jnp.einsum('bhqk,bhkd->bhqd', prob_ref, V)

    assert ctx.shape == (B, H, S, Dh)
    assert prob.shape == (B, H, S, S)
    # Tolerances account for the bf16 matmul path.
    assert jnp.allclose(prob, prob_ref, atol=3e-2)
    assert jnp.allclose(ctx, ctx_ref, atol=5e-2)
    assert jnp.allclose(ctx_flash, ctx_ref, atol=5e-2)
    assert jnp.allclose(jnp.sum(prob, axis=-1), 1.0, atol=1e-3)
    assert float(jnp.max(prob[..., -2:])) < 1e-6

    print("KERNEL_OK")
</pallas_src>

<mosaic_0001>
module attributes {stable_mosaic.version = 11 : i64} {
  func.func @_attn_prob_kernel(%arg0: i32, %arg1: i32, %arg2: i32, %arg3: memref<1x4x8x32xbf16, #tpu.memory_space<vmem>>, %arg4: memref<1x4x8x32xbf16, #tpu.memory_space<vmem>>, %arg5: memref<1x4x8x32xbf16, #tpu.memory_space<vmem>>, %arg6: memref<4x8x8xbf16, #tpu.memory_space<vmem>>, %arg7: memref<1x1x8x8xi8, #tpu.memory_space<vmem>>, %arg8: memref<1x8x128xf32, #tpu.memory_space<vmem>>, %arg9: memref<1x4x8x8xf32, #tpu.memory_space<vmem>>) attributes {dimension_semantics = [#tpu.dimension_semantics<parallel>, #tpu.dimension_semantics<parallel>, #tpu.dimension_semantics<parallel>], iteration_bounds = array<i64: 2, 1, 1>, scalar_prefetch = 0 : i64, scratch_operands = 0 : i64, tpu.core_type = #tpu.core_type<tc>, window_params = [{transform_indices = @transform_0, window_bounds = array<i64: 1, 4, 8, 32>}, {transform_indices = @transform_1, window_bounds = array<i64: 1, 4, 8, 32>}, {transform_indices = @transform_2, window_bounds = array<i64: 1, 4, 8, 32>}, {transform_indices = @transform_3, window_bounds = array<i64: 4, 8, 8>}, {transform_indices = @transform_4, window_bounds = array<i64: 1, 1, 8, 8>}, {transform_indices = @transform_5, window_bounds = array<i64: 1, 8, 128>}, {transform_indices = @transform_6, window_bounds = array<i64: 1, 4, 8, 8>}]} {
    %c0 = arith.constant 0 : index
    %c0_0 = arith.constant 0 : index
    %c0_1 = arith.constant 0 : index
    %c0_2 = arith.constant 0 : index
    %0 = vector.load %arg3[%c0, %c0_0, %c0_1, %c0_2] : memref<1x4x8x32xbf16, #tpu.memory_space<vmem>>, vector<1x4x8x32xbf16>
    %1 = vector.shape_cast %0 : vector<1x4x8x32xbf16> to vector<4x8x32xbf16>
    %c0_3 = arith.constant 0 : index
    %c0_4 = arith.constant 0 : index
    %c0_5 = arith.constant 0 : index
    %c0_6 = arith.constant 0 : index
    %2 = vector.load %arg4[%c0_3, %c0_4, %c0_5, %c0_6] : memref<1x4x8x32xbf16, #tpu.memory_space<vmem>>, vector<1x4x8x32xbf16>
    %3 = vector.shape_cast %2 : vector<1x4x8x32xbf16> to vector<4x8x32xbf16>
    %c0_7 = arith.constant 0 : index
    %c0_8 = arith.constant 0 : index
    %c0_9 = arith.constant 0 : index
    %c0_10 = arith.constant 0 : index
    %4 = vector.load %arg5[%c0_7, %c0_8, %c0_9, %c0_10] : memref<1x4x8x32xbf16, #tpu.memory_space<vmem>>, vector<1x4x8x32xbf16>
    %5 = vector.shape_cast %4 : vector<1x4x8x32xbf16> to vector<4x8x32xbf16>
    %c0_11 = arith.constant 0 : index
    %c0_12 = arith.constant 0 : index
    %c0_13 = arith.constant 0 : index
    %c0_14 = arith.constant 0 : index
    %6 = vector.load %arg7[%c0_11, %c0_12, %c0_13, %c0_14] : memref<1x1x8x8xi8, #tpu.memory_space<vmem>>, vector<1x1x8x8xi8>
    %7 = vector.shape_cast %6 : vector<1x1x8x8xi8> to vector<8x8xi8>
    %c0_i8 = arith.constant 0 : i8
    %8 = vector.broadcast %c0_i8 : i8 to vector<8x8xi8>
    %9 = arith.cmpi ne, %7, %8 : vector<8x8xi8>
    %10 = vector.shape_cast %9 : vector<8x8xi1> to vector<1x8x8xi1>
    %cst = arith.constant dense<0.000000e+00> : vector<4x8x8xf32>
    %11 = tpu.matmul %1, %3, %cst {dimension_numbers = #tpu.dot_dimension_numbers<[2], [2], [1], [1], [0, 0, 0, 1, 1, 1], [0], [0]>} : vector<4x8x32xbf16>, vector<4x8x32xbf16>, vector<4x8x8xf32> -> vector<4x8x8xf32>
    %c0_15 = arith.constant 0 : index
    %c0_16 = arith.constant 0 : index
    %c0_17 = arith.constant 0 : index
    %12 = vector.load %arg6[%c0_15, %c0_16, %c0_17] : memref<4x8x8xbf16, #tpu.memory_space<vmem>>, vector<4x8x8xbf16>
    %13 = arith.extf %12 : vector<4x8x8xbf16> to vector<4x8x8xf32>
    %14 = arith.addf %11, %13 : vector<4x8x8xf32>
    %cst_18 = arith.constant -1.000000e+09 : f32
    %15 = vector.shape_cast %10 : vector<1x8x8xi1> to vector<1x8x8xi1>
    %16 = vector.broadcast %15 : vector<1x8x8xi1> to vector<4x8x8xi1>
    %17 = vector.broadcast %cst_18 : f32 to vector<4x8x8xf32>
    %18 = arith.select %16, %17, %14 : vector<4x8x8xi1>, vector<4x8x8xf32>
    %cst_19 = arith.constant dense<0xFF800000> : vector<4x8xf32>
    %19 = vector.multi_reduction <maximumf>, %18, %cst_19 [2] : vector<4x8x8xf32> to vector<4x8xf32>
    %20 = vector.shape_cast %19 : vector<4x8xf32> to vector<4x8x1xf32>
    %21 = vector.broadcast %20 : vector<4x8x1xf32> to vector<4x8x8xf32>
    %22 = arith.subf %18, %21 : vector<4x8x8xf32>
    %23 = math.exp %22 : vector<4x8x8xf32>
    %cst_20 = arith.constant dense<0.000000e+00> : vector<4x8xf32>
    %24 = vector.multi_reduction <add>, %23, %cst_20 [2] : vector<4x8x8xf32> to vector<4x8xf32>
    %25 = vector.shape_cast %24 : vector<4x8xf32> to vector<4x8x1xf32>
    %cst_21 = arith.constant 1.000000e+00 : f32
    %26 = vector.broadcast %cst_21 : f32 to vector<4x8x1xf32>
    %27 = arith.divf %26, %25 : vector<4x8x1xf32>
    %28 = vector.broadcast %27 : vector<4x8x1xf32> to vector<4x8x8xf32>
    %29 = arith.mulf %23, %28 : vector<4x8x8xf32>
    %30 = arith.truncf %29 : vector<4x8x8xf32> to vector<4x8x8xbf16>
    %cst_22 = arith.constant dense<0.000000e+00> : vector<4x8x32xf32>
    %31 = tpu.matmul %30, %5, %cst_22 {dimension_numbers = #tpu.dot_dimension_numbers<[2], [1], [1], [2], [0, 0, 0, 1, 1, 2], [0], [0]>} : vector<4x8x8xbf16>, vector<4x8x32xbf16>, vector<4x8x32xf32> -> vector<4x8x32xf32>
    %32 = vector.extract_strided_slice %31 {offsets = [0, 0, 0], sizes = [1, 8, 32], strides = [1, 1, 1]} : vector<4x8x32xf32> to vector<1x8x32xf32>
    %33 = vector.shape_cast %32 : vector<1x8x32xf32> to vector<8x32xf32>
    %c0_23 = arith.constant 0 : index
    %c0_24 = arith.constant 0 : index
    %c0_25 = arith.constant 0 : index
    %34 = vector.load %arg8[%c0_23, %c0_24, %c0_25] : memref<1x8x128xf32, #tpu.memory_space<vmem>>, vector<1x8x32xf32>
    %35 = vector.shape_cast %34 : vector<1x8x32xf32> to vector<8x32xf32>
    %36 = vector.shape_cast %33 : vector<8x32xf32> to vector<1x8x32xf32>
    tpu.vector_store %arg8[%c0_23, %c0_24, %c0_25], %36 {strides = array<i32>} : memref<1x8x128xf32, #tpu.memory_space<vmem>>, vector<1x8x32xf32>,
    %37 = vector.extract_strided_slice %31 {offsets = [1, 0, 0], sizes = [1, 8, 32], strides = [1, 1, 1]} : vector<4x8x32xf32> to vector<1x8x32xf32>
    %38 = vector.shape_cast %37 : vector<1x8x32xf32> to vector<8x32xf32>
    %c0_26 = arith.constant 0 : index
    %c0_27 = arith.constant 0 : index
    %c32 = arith.constant 32 : index
    %39 = vector.load %arg8[%c0_26, %c0_27, %c32] : memref<1x8x128xf32, #tpu.memory_space<vmem>>, vector<1x8x32xf32>
    %40 = vector.shape_cast %39 : vector<1x8x32xf32> to vector<8x32xf32>
    %41 = vector.shape_cast %38 : vector<8x32xf32> to vector<1x8x32xf32>
    tpu.vector_store %arg8[%c0_26, %c0_27, %c32], %41 {strides = array<i32>} : memref<1x8x128xf32, #tpu.memory_space<vmem>>, vector<1x8x32xf32>,
    %42 = vector.extract_strided_slice %31 {offsets = [2, 0, 0], sizes = [1, 8, 32], strides = [1, 1, 1]} : vector<4x8x32xf32> to vector<1x8x32xf32>
    %43 = vector.shape_cast %42 : vector<1x8x32xf32> to vector<8x32xf32>
    %c0_28 = arith.constant 0 : index
    %c0_29 = arith.constant 0 : index
    %c64 = arith.constant 64 : index
    %44 = vector.load %arg8[%c0_28, %c0_29, %c64] : memref<1x8x128xf32, #tpu.memory_space<vmem>>, vector<1x8x32xf32>
    %45 = vector.shape_cast %44 : vector<1x8x32xf32> to vector<8x32xf32>
    %46 = vector.shape_cast %43 : vector<8x32xf32> to vector<1x8x32xf32>
    tpu.vector_store %arg8[%c0_28, %c0_29, %c64], %46 {strides = array<i32>} : memref<1x8x128xf32, #tpu.memory_space<vmem>>, vector<1x8x32xf32>,
    %47 = vector.extract_strided_slice %31 {offsets = [3, 0, 0], sizes = [1, 8, 32], strides = [1, 1, 1]} : vector<4x8x32xf32> to vector<1x8x32xf32>
    %48 = vector.shape_cast %47 : vector<1x8x32xf32> to vector<8x32xf32>
    %c0_30 = arith.constant 0 : index
    %c0_31 = arith.constant 0 : index
    %c96 = arith.constant 96 : index
    %49 = vector.load %arg8[%c0_30, %c0_31, %c96] : memref<1x8x128xf32, #tpu.memory_space<vmem>>, vector<1x8x32xf32>
    %50 = vector.shape_cast %49 : vector<1x8x32xf32> to vector<8x32xf32>
    %51 = vector.shape_cast %48 : vector<8x32xf32> to vector<1x8x32xf32>
    tpu.vector_store %arg8[%c0_30, %c0_31, %c96], %51 {strides = array<i32>} : memref<1x8x128xf32, #tpu.memory_space<vmem>>, vector<1x8x32xf32>,
    %c0_32 = arith.constant 0 : index
    %c0_33 = arith.constant 0 : index
    %c0_34 = arith.constant 0 : index
    %c0_35 = arith.constant 0 : index
    %52 = vector.load %arg9[%c0_32, %c0_33, %c0_34, %c0_35] : memref<1x4x8x8xf32, #tpu.memory_space<vmem>>, vector<1x4x8x8xf32>
    %53 = vector.shape_cast %52 : vector<1x4x8x8xf32> to vector<4x8x8xf32>
    %54 = vector.shape_cast %29 : vector<4x8x8xf32> to vector<1x4x8x8xf32>
    tpu.vector_store %arg9[%c0_32, %c0_33, %c0_34, %c0_35], %54 {strides = array<i32>} : memref<1x4x8x8xf32, #tpu.memory_space<vmem>>, vector<1x4x8x8xf32>,
    return
  }
  func.func @transform_0(%arg0: i32, %arg1: i32, %arg2: i32) -> (i32, i32, i32, i32) {
    %c0_i32 = arith.constant 0 : i32
    %c0_i32_0 = arith.constant 0 : i32
    return %arg0, %arg1, %arg2, %c0_i32 : i32, i32, i32, i32
  }
  func.func @transform_1(%arg0: i32, %arg1: i32, %arg2: i32) -> (i32, i32, i32, i32) {
    %c0_i32 = arith.constant 0 : i32
    %c0_i32_0 = arith.constant 0 : i32
    %c0_i32_1 = arith.constant 0 : i32
    return %arg0, %arg1, %c0_i32, %c0_i32_0 : i32, i32, i32, i32
  }
  func.func @transform_2(%arg0: i32, %arg1: i32, %arg2: i32) -> (i32, i32, i32, i32) {
    %c0_i32 = arith.constant 0 : i32
    %c0_i32_0 = arith.constant 0 : i32
    %c0_i32_1 = arith.constant 0 : i32
    return %arg0, %arg1, %c0_i32, %c0_i32_0 : i32, i32, i32, i32
  }
  func.func @transform_3(%arg0: i32, %arg1: i32, %arg2: i32) -> (i32, i32, i32) {
    %c0_i32 = arith.constant 0 : i32
    %c0_i32_0 = arith.constant 0 : i32
    return %arg1, %arg2, %c0_i32 : i32, i32, i32
  }
  func.func @transform_4(%arg0: i32, %arg1: i32, %arg2: i32) -> (i32, i32, i32, i32) {
    %c0_i32 = arith.constant 0 : i32
    %c0_i32_0 = arith.constant 0 : i32
    %c0_i32_1 = arith.constant 0 : i32
    return %arg0, %c0_i32, %arg2, %c0_i32_0 : i32, i32, i32, i32
  }
  func.func @transform_5(%arg0: i32, %arg1: i32, %arg2: i32) -> (i32, i32, i32) {
    %c0_i32 = arith.constant 0 : i32
    return %arg0, %arg2, %arg1 : i32, i32, i32
  }
  func.func @transform_6(%arg0: i32, %arg1: i32, %arg2: i32) -> (i32, i32, i32, i32) {
    %c0_i32 = arith.constant 0 : i32
    %c0_i32_0 = arith.constant 0 : i32
    return %arg0, %arg1, %arg2, %c0_i32 : i32, i32, i32, i32
  }
}

</mosaic_0001>

<bundles_post_ra>
// kernel: scaled_dot_product_attention.1
= control target key start
LH: loop header
LB: loop body
LE: loop exit
PB: predicated region body
PF: predicated region fallthrough
CT: control target
= control target key end

     0   :  { %12 = vsyncpa [#allocation3], 0  ;;  %s1693_s0 = inlined_call_operand.vmem [shape: bf16[2,4,8,32], index: 0, kind: input, shape index: {}]   ;;  %s1694_s1 = inlined_call_operand.vmem [shape: bf16[2,4,8,32], index: 1, kind: input, shape index: {}]   ;;  %s1695_s2 = inlined_call_operand.vmem [shape: bf16[2,4,8,32], index: 2, kind: input, shape index: {}]   ;;  %s1696_s3 = inlined_call_operand.vmem [shape: bf16[4,8,8], index: 3, kind: input, shape index: {}]   ;;  %s1697_s4 = inlined_call_operand.vmem [shape: s8[2,1,8,8], index: 4, kind: input, shape index: {}]   ;;  %s1698_s5 = inlined_call_operand.vmem [shape: f32[2,8,128], index: 5, kind: output, shape index: {0}]   ;;  %s1699_s6 = inlined_call_operand.hbm [shape: f32[2,4,8,8], index: 6, kind: output, shape index: {1}]  }
   0x1   :  { %14 = vsyncpa [#allocation3 + $0x1], 0  ;;  %s1472_s21 = smov 0   ;;  %s1474_s22 = smov 0  }
   0x2   :  { %s1476_s23 = smov 0   ;;  %s1478_s24 = smov 0  }
   0x3   :  { %s1480_s25 = smov 0   ;;  %s1482_s26 = smov 0  }
   0x4 LB: > { %s1164_s27 = sadd.s32 4294967295, %s1426_s26   ;;  %s1165_s28 = sadd.s32 4294967294, %s1426_s26   ;;  %s1426_s26 = sphi %s1482_s26, %s20_s26   ;;  %s1422_s25 = sphi %s1480_s25, %s1708_s25   ;;  %s1418_s24 = sphi %s1478_s24, %s1707_s24   ;;  %s1414_s23 = sphi %s1476_s23, %s1706_s23   ;;  %s1410_s22 = sphi %s1474_s22, %s1705_s22   ;;  %s1406_s21 = sphi %s1472_s21, %s1704_s21  }
   0x5   : > { %s39_s29 = sadd.s32 1, %s1422_s25  ;;  %s222_s30 = sadd.s32 1, %s1414_s23 }
   0x6   : > { %p41_p0 = scmp.ge.s32.totalorder %s39_s29, 2  ;;  %p232_p1 = scmp.ne.s32.totalorder %s1414_s23, %s1410_s22 }
   0x7   : > { %p233_p2 = scmp.eq.s32.totalorder %s1164_s27, 1  ;;  %p238_p3 = scmp.ne.s32.totalorder %s1410_s22, %s1406_s21 }
   0x8   : > { %s1710_s29 = smov (%p41_p0, %s39_s29), 0  ;;  %p239_p5 = scmp.eq.s32.totalorder %s1165_s28, 1 }
   0x9   : > { %p1512_p4 = por %p233_p2, %p232_p1  ;;  %s215_s8 = ssub.s32 %s1422_s25, %s1710_s29 }
   0xa   : > { %p1169_p6 = scmp.ge.s32.totalorder %s1426_s26, 1  ;;  %p220_p7 = scmp.eq.s32.totalorder %s215_s8, 0 }
   0xb   : > { %p1519_p8 = por %p239_p5, %p238_p3  ;;  %p321_p9 = scmp.lt.s32.totalorder %s1426_s26, 3 }
   0xc   : > { %s1525_s10 = scalar_select %p220_p7, %s1414_s23, %s222_s30  }
   0xd   : > { %p322_p10 = pnand %p1169_p6, %p321_p9 }
   0xe   : > { %p402_p11 = scmp.lt.s32.totalorder (!%p322_p10), %s1418_s24, 1  ;;  %v1428_v0 = vmov (!%p322_p10), 0.0   ;;  %vm1429_vm0 = vmmov (!%p322_p10), 0   ;;  %vm486_vm1 = vcmask (!%p322_p10), 261120   ;;  %v1430_v14 = vmov (!%p322_p10), 0   ;;  %v1197_v16 = vld [vmem:[%s1696_s3] sm:$0xff] (!%p322_p10)  }
   0xf   : > { %325 = sbr.rel (%p322_p10) target bundleno = 915 (0x393), region = 40  ;;  %1221 = vmatprep.subr.bf16.mxu0 (!%p322_p10), %v1428_v0  ;;  %1227 = vmatprep.subr.bf16.mxu1 (!%p322_p10), %v1428_v0  ;;  %v1198_v18 = vunpack.c.l.bf16 (!%p322_p10), %v1197_v16  ;;  %v1199_v19 = vunpack.c.h.bf16 (!%p322_p10), %v1197_v16  ;;  %vm680_vm4 = vcmask (!%p322_p10), 64512   ;;  %v1204_v29 = vld [vmem:[%s1696_s3 + $0x8] sm:$0xff] (!%p322_p10)   ;;  %vm736_vm5 = vcmask (!%p322_p10), 1043456   ;;  %s1195_s8 = sshll.u32 (!%p322_p10), %s1418_s24, 9 }
  0x10   : > { %1223 = vmatprep.mubr.msk.bf16.mxu0 (!%p322_p10), %vm1429_vm0, %v1428_v0  ;;  %1229 = vmatprep.mubr.msk.bf16.mxu1 (!%p322_p10), %vm1429_vm0, %v1428_v0  ;;  %v1202_v35 = vunpack.c.l.bf16 (!%p322_p10), %v1204_v29  ;;  %v1203_v36 = vunpack.c.h.bf16 (!%p322_p10), %v1204_v29  ;;  %s1636_s16 = scalar_lea.hbm (!%p322_p10), %s1699_s6, %s1195_s8 }
  0x16   : > { %s1531_s11 = scalar_select %p402_p11, %s1418_s24, 1 }
  0x18   : > { %s1538_s12 = sshll.u32 %s1531_s11, 4  ;;  %s1177_s19 = sshll.u32 %s1531_s11, 1 }
  0x19   : > { %s422_s15 = scalar_lea.vmem %s1694_s1, %s1538_s12  ;;  %s412_s18 = scalar_lea.vmem %s1693_s0, %s1538_s12 }
  0x1a   : > { %v468_v1 = vld [vmem:[%s422_s15] sm:$0xf]  ;;  %v469_v2 = vld [vmem:[%s422_s15 + $0x4] sm:$0xf]  ;;  %v470_v5 = vld [vmem:[%s422_s15 + $0x8] sm:$0xf]  ;;  %s449_s28 = scalar_lea.vmem %s1697_s4, %s1177_s19  ;;  %s432_s17 = scalar_lea.vmem %s1695_s2, %s1538_s12 }
  0x1b   : > { %v491_v3 = vsel %vm486_vm1, %v468_v1, 0  ;;  %v537_v4 = vsel %vm486_vm1, %v469_v2, 0  ;;  %v471_v6 = vld [vmem:[%s422_s15 + $0xc] sm:$0xf]  ;;  %v464_v7 = vld [vmem:[%s412_s18] sm:$0xf] }
  0x1c   : > { %1222 = vmatpush3.bf16.xpose.msra.mxu0 %v491_v3  ;;  %1228 = vmatpush3.bf16.xpose.msra.mxu1 %v537_v4  ;;  %v465_v8 = vld [vmem:[%s412_s18 + $0x4] sm:$0xf]  ;;  %v583_v9 = vsel %vm486_vm1, %v470_v5, 0  ;;  %v629_v10 = vsel %vm486_vm1, %v471_v6, 0  ;;  %v466_v11 = vld [vmem:[%s412_s18 + $0x8] sm:$0xf] }
  0x1d   : > { %1233 = vmatprep.subr.bf16.mxu0 %v1428_v0  ;;  %1239 = vmatprep.subr.bf16.mxu1 %v1428_v0  ;;  %v467_v12 = vld [vmem:[%s412_s18 + $0xc] sm:$0xf]  ;;  %v476_v13 = vld [vmem:[%s449_s28] sm:$0x3]  ;;  %s398_s12 = sand.u32 1, %s1410_s22   ;;  %s1178_s20 = sshll.u32 %s1531_s11, 3 }
  0x1e   : > { %vm477_vm2 = vnez %v476_v13  ;;  %v474_v13 = vld [vmem:[%s432_s17 + $0x8] sm:$0xf]  ;;  %s1170_s18 = sshll.u32 %s398_s12, 5  ;;  %s1629_s30 = scalar_lea.vmem %s1698_s5, %s1178_s20 }
  0x1f   : > { %v671_v15 = vsel %vm477_vm2, 16843009, %v1430_v14  ;;  %v830_v14 = vsel %vm736_vm5, %v474_v13, 0  ;;  %s1607_s19 = scalar_lea.vmem [#allocation2], %s1170_s18  ;;  %s1644_s11 = scalar_lea.sflag [#allocation3], %s398_s12 }
  0x20   : > { %v672_v17 = vunpack.c.0.s8 %v671_v15  ;;  %v475_v15 = vld [vmem:[%s432_s17 + $0xc] sm:$0xf]  ;;  %s971_s13 = sshll.u32 %s1607_s19, 4  ;;  %s1638_s13 = int_to_ptr.vmem [resolvable:$true] %s971_s13 }
  0x21   : > { %v876_v16 = vsel %vm736_vm5, %v475_v15, 0  ;;  %s1348_s24 = scalar_lea.vmem %s1638_s13, 512 }
  0x22   : > { %vm1575_vm3 = vcmp.ne.s32.totalorder %v672_v17, 0  ;;  %p1349_p12 = scmp.ne.s32.totalorder %s1638_s13, %s1348_s24 }
  0x23   : > { %1224 = vmatmul.mubr.msk.bf16.vlgmr.msra.gmra.mrb[0].mxu0 %vm486_vm1, %v464_v7  ;;  %1230 = vmatmul.mubr.msk.bf16.vlgmr.msra.gmra.mrb[0].mxu1 %vm486_vm1, %v465_v8 }
  0x24   : > { %1234 = vmatpush3.bf16.xpose.msra.mxu0 %v583_v9  ;;  %1240 = vmatpush3.bf16.xpose.msra.mxu1 %v629_v10  ;;  %v472_v9 = vld [vmem:[%s432_s17] sm:$0xf]  ;;  %p1350_p13 = pnand %p1349_p12, %p1512_p4 }
  0x25   : > { %1235 = vmatprep.mubr.msk.bf16.mxu0 %vm1429_vm0, %v1428_v0  ;;  %1241 = vmatprep.mubr.msk.bf16.mxu1 %vm1429_vm0, %v1428_v0  ;;  %v738_v10 = vsel %vm736_vm5, %v472_v9, 0 }
  0x26   : > { %1245 = vmatprep.subr.bf16.mxu0 %v1428_v0  ;;  %1251 = vmatprep.subr.bf16.mxu1 %v1428_v0  ;;  %p1351_p0 = pneg %p1350_p13 }
  0x2b   : > { %1236 = vmatmul.mubr.msk.bf16.vlgmr.msra.gmra.mrb[4].mxu0 %vm486_vm1, %v466_v11  ;;  %1242 = vmatmul.mubr.msk.bf16.vlgmr.msra.gmra.mrb[4].mxu1 %vm486_vm1, %v467_v12  ;;  %v473_v11 = vld [vmem:[%s432_s17 + $0x4] sm:$0xf]  ;;  %s1431_s17 = smov [#allocation2]  }
  0x2c   : > { %1247 = vmatprep.mubr.msk.bf16.mxu0 %vm1429_vm0, %v1428_v0  ;;  %1253 = vmatprep.mubr.msk.bf16.mxu1 %vm1429_vm0, %v1428_v0  ;;  %v784_v12 = vsel %vm736_vm5, %v473_v11, 0  ;;  %s1352_s18 = sshll.u32 %s1431_s17, 4  ;;  %s1353_s18 = int_to_ptr.vmem [resolvable:$false] %s1352_s18 }
  0x2d   : > { %1246 = vmatpush3.bf16.msra.mxu0 %v738_v10  ;;  %1252 = vmatpush3.bf16.msra.mxu1 %v784_v12  ;;  %p1355_p1 = scmp.lt.s32.totalorder %s1638_s13, %s1353_s18 }
  0x2e   : > { %1257 = vmatprep.subr.bf16.mxu0 %v1428_v0  ;;  %1263 = vmatprep.subr.bf16.mxu1 %v1428_v0 }
  0xf6   : > { %v527_v20 = vpop.f32.mrb[0].mxu0  ;;  %v573_v21 = vpop.f32.mrb[0].mxu1 }
  0xf7   : > { %v528_v23 = vadd.f32 %v1198_v18, %v527_v20  ;;  %v1225_v24 = vpop.f32.mrb[1].mxu0  ;;  %v574_v25 = vadd.f32 %v1199_v19, %v573_v21  ;;  %v1231_v26 = vpop.f32.mrb[1].mxu1 }
  0xf8   : > { %v530_v27 = vpop.f32.mrb[2].mxu0  ;;  %v576_v28 = vpop.f32.mrb[2].mxu1 }
  0xf9   : > { %v1226_v30 = vpop.f32.mrb[3].mxu0  ;;  %v1232_v31 = vpop.f32.mrb[3].mxu1  ;;  %v676_v32 = vsel %vm1575_vm3, -1e+09, %v528_v23  ;;  %v677_v33 = vsel %vm1575_vm3, -1e+09, %v574_v25 }
  0xfa   : > { %v681_v34 = vsel %vm680_vm4, %v676_v32, -inf  ;;  %v684_v37 = vsel %vm680_vm4, %v677_v33, -inf }
  0xfb   : > { %682 = vmax.xlane.f32.xlu0 %v681_v34 }
  0xfe   : > { %v619_v38 = vpop.f32.mrb[4].mxu0  ;;  %v665_v39 = vpop.f32.mrb[4].mxu1 }
  0xff   : > { %v620_v40 = vadd.f32 %v1202_v35, %v619_v38  ;;  %685 = vmax.xlane.f32.xlu0 %v684_v37  ;;  %v1237_v41 = vpop.f32.mrb[5].mxu0  ;;  %v666_v42 = vadd.f32 %v1203_v36, %v665_v39  ;;  %v1243_v43 = vpop.f32.mrb[5].mxu1 }
 0x100   : > { %v622_v44 = vpop.f32.mrb[6].mxu0  ;;  %v668_v45 = vpop.f32.mrb[6].mxu1 }
 0x101   : > { %v1238_v46 = vpop.f32.mrb[7].mxu0  ;;  %v1244_v47 = vpop.f32.mrb[7].mxu1  ;;  %v678_v48 = vsel %vm1575_vm3, -1e+09, %v620_v40  ;;  %v679_v49 = vsel %vm1575_vm3, -1e+09, %v666_v42 }
 0x102   : > { %v687_v50 = vsel %vm680_vm4, %v678_v48, -inf  ;;  %v690_v51 = vsel %vm680_vm4, %v679_v49, -inf }
 0x103   : > { %688 = vmax.xlane.f32.xlu1 %v687_v50 }
 0x107   : > { %691 = vmax.xlane.f32.xlu1 %v690_v51 }
 0x188   : > { %v683_v52 = vpop.xlane.xlu0 %682 }
 0x189   : > { %v693_v53 = vsub.f32 %v676_v32, %v683_v52 }
 0x18b   : > { %v697_v54 = vmul.f32 1.442695, %v693_v53 }
 0x18c   : > { %v686_v55 = vpop.xlane.xlu0 %685 }
 0x18d   : > { %1332 = vpow2.f32 %v697_v54  ;;  %v694_v56 = vsub.f32 %v677_v33, %v686_v55 }
 0x18f   : > { %v699_v57 = vmul.f32 1.442695, %v694_v56 }
 0x190   : > { %v689_v58 = vpop.xlane.xlu1 %688 }
 0x191   : > { %1334 = vpow2.f32 %v699_v57  ;;  %v695_v59 = vsub.f32 %v678_v48, %v689_v58 }
 0x193   : > { %v701_v60 = vmul.f32 1.442695, %v695_v59 }
 0x194   : > { %v692_v61 = vpop.xlane.xlu1 %691 }
 0x195   : > { %1336 = vpow2.f32 %v701_v60  ;;  %v696_v62 = vsub.f32 %v679_v49, %v692_v61 }
 0x197   : > { %v1333_v63 = vpop.eup %1332  ;;  %v703_v1 = vmul.f32 1.442695, %v696_v62 }
 0x198   : > { %v705_v2 = vsel %vm680_vm4, %v1333_v63, 0.0 }
 0x199   : > { %1338 = vpow2.f32 %v703_v1  ;;  %706 = vadd.xlane.f32.xlu0 %v705_v2 }
 0x19b   : > { %v1335_v3 = vpop.eup %1334 }
 0x19c   : > { %v708_v4 = vsel %vm680_vm4, %v1335_v3, 0.0 }
 0x19d   : > { %709 = vadd.xlane.f32.xlu1 %v708_v4 }
 0x19f   : > { %v1337_v5 = vpop.eup %1336 }
 0x1a0   : > { %v711_v6 = vsel %vm680_vm4, %v1337_v5, 0.0 }
 0x1a1   : > { %712 = vadd.xlane.f32.xlu0 %v711_v6 }
 0x1a3   : > { %v1339_v7 = vpop.eup %1338 }
 0x1a4   : > { %v714_v8 = vsel %vm680_vm4, %v1339_v7, 0.0 }
 0x1a5   : > { %715 = vadd.xlane.f32.xlu1 %v714_v8 }
 0x226   : > { %v707_v17 = vpop.xlane.xlu0 %706 }
 0x227   : > { %1340 = vrcp.f32 %v707_v17 }
 0x22a   : > { %v710_v18 = vpop.xlane.xlu1 %709 }
 0x22b   : > { %1342 = vrcp.f32 %v710_v18 }
 0x22e   : > { %v713_v19 = vpop.xlane.xlu0 %712 }
 0x22f   : > { %1344 = vrcp.f32 %v713_v19 }
 0x231   : > { %v1341_v20 = vpop.eup %1340 }
 0x232   : > { %v725_v21 = vmul.f32 %v1341_v20, %v1333_v63  ;;  %v716_v22 = vpop.xlane.xlu1 %715 }
 0x233   : > { %1346 = vrcp.f32 %v716_v22 }
 0x234   : > { %937 = vst.msk [vmem:[%s1607_s19] sm:$0xff] %vm680_vm4, %v725_v21  ;;  %v729_v23 = vpack.c.bf16 %v725_v21, %v725_v21 }
 0x235   : > { %v1343_v24 = vpop.eup %1342 }
 0x236   : > { %v726_v25 = vmul.f32 %v1343_v24, %v1335_v3  ;;  %1248 = vmatmul.mubr.msk.bf16.vlgmr.msra.gmra.mrb[8].mxu0 %vm680_vm4, %v729_v23 }
 0x237   : > { %1258 = vmatpush3.bf16.msra.mxu0 %v830_v14  ;;  %1259 = vmatprep.mubr.msk.bf16.mxu0 %vm1429_vm0, %v1428_v0 }
 0x238   : > { %938 = vst.msk [vmem:[%s1607_s19 + $0x8] sm:$0xff] %vm680_vm4, %v726_v25  ;;  %v730_v26 = vpack.c.bf16 %v726_v25, %v726_v25 }
 0x239   : > { %v1345_v27 = vpop.eup %1344 }
 0x23a   : > { %v727_v28 = vmul.f32 %v1345_v27, %v1337_v5  ;;  %1254 = vmatmul.mubr.msk.bf16.vlgmr.msra.gmra.mrb[8].mxu1 %vm680_vm4, %v730_v26 }
 0x23b   : > { %1264 = vmatpush3.bf16.msra.mxu1 %v876_v16  ;;  %1265 = vmatprep.mubr.msk.bf16.mxu1 %vm1429_vm0, %v1428_v0 }
 0x23c   : > { %939 = vst.msk [vmem:[%s1607_s19 + $0x10] sm:$0xff] %vm680_vm4, %v727_v28  ;;  %v731_v29 = vpack.c.bf16 %v727_v28, %v727_v28 }
 0x23d   : > { %v1347_v30 = vpop.eup %1346 }
 0x23e   : > { %v728_v31 = vmul.f32 %v1347_v30, %v1339_v7  ;;  %1260 = vmatmul.mubr.msk.bf16.vlgmr.msra.gmra.mrb[12].mxu0 %vm680_vm4, %v731_v29 }
 0x240   : > { %940 = vst.msk [vmem:[%s1607_s19 + $0x18] sm:$0xff] %vm680_vm4, %v728_v31  ;;  %v732_v32 = vpack.c.bf16 %v728_v31, %v728_v31  ;;  %s1354_s19 = scalar_lea.vmem %s1353_s18, 1024 }
 0x241   : > { %p1356_p2 = scmp.lt.s32.totalorder %s1354_s19, %s1348_s24 }
 0x242   : > { %1266 = vmatmul.mubr.msk.bf16.vlgmr.msra.gmra.mrb[12].mxu1 %vm680_vm4, %v732_v32 }
 0x243   : > { %p1357_p3 = por %p1356_p2, %p1355_p1 }
 0x245   : > { %p1358_p5 = pnand %p1357_p3, %p1351_p0 }
 0x309   : > { %v774_v0 = vpop.f32.mrb[8].mxu0 }
 0x30a   : > { %918 = vst.msk [vmem:[%s1629_s30] sm:$0xff] %vm486_vm1, %v774_v0  ;;  %v1249_v33 = vpop.f32.mrb[9].mxu0 }
 0x30b   : > { %v777_v34 = vpop.f32.mrb[10].mxu0 }
 0x30c   : > { %1361 = shalt.err (!%p1358_p5)
}
 0x30d   : > { %s1362_s12 = scalar_lea.hbm %s1636_s16, 512  ;;  %s1366_s28 = scalar_lea.hbm %s1699_s6, 1024 }
 0x30e   : > { %p1363_p6 = scmp.ne.s32.totalorder %s1636_s16, %s1362_s12  ;;  %p1367_p10 = scmp.lt.u32.totalorder %s1636_s16, %s1699_s6 }
 0x30f   : > { %p1368_p11 = scmp.lt.u32.totalorder %s1366_s28, %s1362_s12  ;;  %p1370_p13 = scmp.lt.u32.totalorder %s1362_s12, %s1636_s16 }
 0x310   : > { %p1364_p7 = pnand %p1363_p6, %p1512_p4 }
 0x311   : > { %p1369_p12 = por %p1368_p11, %p1367_p10 }
 0x312   : > { %p1365_p9 = pneg %p1364_p7 }
 0x313   : > { %p1371_p0 = por %p1370_p13, %p1369_p12 }
 0x315   : > { %p1372_p1 = pnand %p1371_p0, %p1365_p9 }
 0x317   : > { %1375 = shalt.err (!%p1372_p1)
}
 0x318   : > { %s1432_s15 = smov 128   ;;  %s1433_s24 = smov 8   ;;  %v1250_v35 = vpop.f32.mrb[11].mxu0  ;;  %v820_v36 = vpop.f32.mrb[8].mxu1  ;;  %vm923_vm6 = vcmask 523520   ;;  %vm929_vm7 = vcmask 785920  }
 0x319   : > { %1269 = dma.vmem_to_hbm [thread:$0]  (%p1512_p4), %s1638_s13, 512, %s1636_s16, %s1644_s11, %s1432_s15, %s1432_s15, %s1433_s24   ;;  %v1255_v37 = vpop.f32.mrb[9].mxu1  ;;  %v866_v40 = vpop.f32.mrb[12].mxu0  ;;  %vm935_vm8 = vcmask 1048320  }
 0x31a   : > { %s1434_s17 = smov 32   ;;  %v823_v38 = vpop.f32.mrb[10].mxu1  ;;  %s1435_s18 = smov 64   ;;  %v1261_v41 = vpop.f32.mrb[13].mxu0 }
 0x31b   : > { %920 = vrot.lane.b32.xlu0 %v820_v36, %s1434_s17  ;;  %v1256_v39 = vpop.f32.mrb[11].mxu1  ;;  %926 = vrot.lane.b32.xlu1 %v866_v40, %s1435_s18  ;;  %v869_v42 = vpop.f32.mrb[14].mxu0  ;;  %s1436_s7 = smov 96  }
 0x31c   : > { %v1262_v43 = vpop.f32.mrb[15].mxu0  ;;  %v912_v44 = vpop.f32.mrb[12].mxu1 }
 0x31d   : > { %v1267_v45 = vpop.f32.mrb[13].mxu1 }
 0x31e   : > { %v915_v46 = vpop.f32.mrb[14].mxu1 }
 0x31f   : > { %932 = vrot.lane.b32.xlu1 %v912_v44, %s1436_s7  ;;  %v1268_v47 = vpop.f32.mrb[15].mxu1 }
 0x38d   : > { %v921_v48 = vpop.permute.xlu0 %920  ;;  %v927_v49 = vpop.permute.xlu1 %926 }
 0x38e   : > { %924 = vst.msk [vmem:[%s1629_s30] sm:$0xff] %vm923_vm6, %v921_v48 }
 0x38f   : > { %930 = vst.msk [vmem:[%s1629_s30] sm:$0xff] %vm929_vm7, %v927_v49 }
 0x391   : > { %v933_v50 = vpop.permute.xlu1 %932 }
 0x392   : > { %936 = vst.msk [vmem:[%s1629_s30] sm:$0xff] %vm935_vm8, %v933_v50 }
 0x393 PF: > { %p1275_p4 = scmp.ge.s32.totalorder %s1426_s26, 2  ;;  %s999_s13 = sand.u32 1, %s1406_s21  }
 0x394   : > { %s1000_s16 = scalar_lea.sflag [#allocation3], %s999_s13 }
 0x395   : > { %p1272_p2 = pnand %p1275_p4, %p1519_p8 }
 0x397   : > { %1401 = dma.done.wait (!%p1272_p2), %s1000_s16, 512  }
 0x398   : > { %1403 = vsyncadd (!%p1272_p2), %s1000_s16, 4294966784  ;;  %s20_s26 = sadd.s32 1, %s1426_s26   ;;  %s1704_s21 = smov %s1410_s22 }
 0x399   : > { %p17_p3 = scmp.ge.s32.totalorder %s20_s26, 4   ;;  %s1705_s22 = smov %s1414_s23 }
 0x39a   : > { %s1706_s23 = smov %s1525_s10  ;;  %s1707_s24 = smov %s1422_s25 }
 0x39b   : > { %s1708_s25 = smov %s1710_s29  ;;  %19 = sbr.rel (!%p17_p3) target bundleno = 4 (0x4), region = 99 }
 0x3a2   :  { %1005 = vsyncpa [#allocation3], 1 }
 0x3a3   :  { %1007 = vsyncpa [#allocation3 + $0x1], 1 }

</bundles_post_ra>
